<compile_context>
chip_gen: v7x
topology: tpu7x:2x2x1
jax: 0.10.0
libtpu: 0.0.40
codegen_flags: <defaults>
</compile_context>

<pallas_src>
import functools
import math

import jax
import jax.numpy as jnp
from jax.experimental import pallas as pl
from jax.experimental.pallas import tpu as pltpu


def _round_up(x: int, m: int) -> int:
    return (x + m - 1) // m * m


def _prologue(x, *, r_max, prefactor, p):
    """Per-edge math on an (8, L) tile.

    Returns (scale, sin_theta, two_cos_theta) where
      scale = sqrt(2/r_max) * cutoff(r) / r  and  theta = pi * r / r_max.
    """
    # 1/r on the EUP (approx) + one Newton step back to full f32 accuracy.
    # NOTE: r == 0 gives NaN, matching the 0/0 of the PyTorch reference.
    inv_r = pl.reciprocal(x, approx=True)
    inv_r = inv_r * (2.0 - x * inv_r)

    # Polynomial cutoff envelope (u**p via unrolled multiplies).
    u = x * (1.0 / r_max)
    up = u
    for _ in range(p - 1):
        up = up * u                      # u**p
    up1 = up * u                         # u**(p+1)
    up2 = up1 * u                        # u**(p+2)
    env = (1.0
           - 0.5 * (p + 1.0) * (p + 2.0) * up
           + float(p) * (p + 2.0) * up1
           - 0.5 * float(p) * (p + 1.0) * up2)
    cutoff = jnp.where(x < r_max, env, 0.0)

    scale = (prefactor * inv_r) * cutoff
    theta = (math.pi / r_max) * x
    return scale, jnp.sin(theta), 2.0 * jnp.cos(theta)


def _dense_kernel(x_ref, o_ref, *, r_max, prefactor, p, K):
    # x_ref: (1, 8, L) edge lengths.  o_ref: (K, 8, L) basis-major, lane-dense.
    x = x_ref[0]                                         # (8, L)
    scale, s_cur, two_c = _prologue(x, r_max=r_max, prefactor=prefactor, p=p)
    s_prev = jnp.zeros_like(s_cur)
    for k in range(K):                                   # Chebyshev recurrence
        o_ref[k] = s_cur * scale
        s_cur, s_prev = two_c * s_cur - s_prev, s_cur


def _flat_kernel(x_ref, o_ref, *, r_max, prefactor, p, K):
    # x_ref: (1, 8, L).  o_ref: (tile*K/128, 128) flat, edge-major / k-minor.
    x = x_ref[0]                                         # (8, L)
    L = x.shape[-1]
    scale, s_cur, two_c = _prologue(x, r_max=r_max, prefactor=prefactor, p=p)
    s_prev = jnp.zeros_like(s_cur)
    rows = []
    for _ in range(K):                                   # Chebyshev recurrence
        rows.append(s_cur * scale)
        s_cur, s_prev = two_c * s_cur - s_prev, s_cur

    rows_per_s = (L * K) // 128
    for s in range(8):                                   # static, 8 iterations
        # (K, L) slab for input sublane s: k on sublanes, edges on lanes.
        tbl = jnp.concatenate([rows[k][s:s + 1, :] for k in range(K)], axis=0)
        # Relayout to flat [edge-major, k-minor] order on the (idle) XLU:
        # (K, L) -> (L, K) -> (L*K/128, 128), then one lane-dense store.
        blk = tbl.T.reshape(rows_per_s, 128)
        o_ref[pl.ds(s * rows_per_s, rows_per_s), :] = blk


def radial_embedding(edge_lengths,
                     *,
                     r_max: float,
                     num_bessel: int,
                     num_polynomial_cutoff: int,
                     tile_e: int = 131072,
                     interleaved_store: bool = True) -> jax.Array:
    """Pallas TPU implementation of MACE RadialEmbeddingBlock.forward (bessel).

    edge_lengths: [E] or [E, 1] array of edge distances.
    Returns: [E, num_bessel] float32.
    """
    r = jnp.asarray(edge_lengths, dtype=jnp.float32).reshape(-1)      # (E,)
    E = int(r.shape[0])
    K = int(num_bessel)
    p = int(num_polynomial_cutoff)
    if E == 0:
        return jnp.zeros((0, K), jnp.float32)

    # Byte-budgeted tile, multiple of 8*128 edges, clamped for small inputs.
    tile = max(1024, min(int(tile_e) // 1024 * 1024, _round_up(E, 1024)))
    if interleaved_store:
        # Keep the in-kernel (K, L) -> flat relayout's narrow intermediate
        # (and its spill footprint) modest.
        tile = min(tile, 16384)
    # v7x megacore: prefer >= 2 grid steps when there is enough work so the
    # "parallel" grid axis can shard across both TensorCores (neutral on
    # single-TC v5e/v6e).
    if E >= 65536 and _round_up(E, 1024) <= tile:
        tile = _round_up((E + 1) // 2, 1024)

    L = tile // 8
    E_pad = _round_up(E, tile)
    G = E_pad // tile
    if E_pad != E:
        # Pad with r_max: cutoff(r_max) == 0, so padded lanes are finite zeros.
        r = jnp.pad(r, (0, E_pad - E), constant_values=float(r_max))
    x = r.reshape(G, 8, L)                               # dense (8, L) blocks

    prefactor = math.sqrt(2.0 / r_max)
    cparams = pltpu.CompilerParams(
        dimension_semantics=("parallel",),
        vmem_limit_bytes=40 * 1024 * 1024,
    )
    in_spec = pl.BlockSpec((1, 8, L), lambda i: (i, 0, 0))

    if interleaved_store:
        try:
            kernel = functools.partial(
                _flat_kernel, r_max=float(r_max), prefactor=float(prefactor),
                p=p, K=K)
            out = pl.pallas_call(
                kernel,
                out_shape=jax.ShapeDtypeStruct((E_pad * K // 128, 128),
                                               jnp.float32),
                grid=(G,),
                in_specs=[in_spec],
                out_specs=pl.BlockSpec((tile * K // 128, 128),
                                       lambda i: (i, 0)),
                compiler_params=cparams,
            )(x)
            out = jax.block_until_ready(out)             # surface any error here
            # Flat row-major order is already edge-major / k-minor.
            return out.reshape(E_pad, K)[:E]
        except Exception:
            # Mosaic could not lower the in-kernel relayout on this chip /
            # jax version -> fall back to the basis-major layout below.
            pass

    kernel = functools.partial(
        _dense_kernel, r_max=float(r_max), prefactor=float(prefactor),
        p=p, K=K)
    out = pl.pallas_call(
        kernel,
        out_shape=jax.ShapeDtypeStruct((K, G * 8, L), jnp.float32),
        grid=(G,),
        in_specs=[in_spec],
        out_specs=pl.BlockSpec((K, 8, L), lambda i: (0, i, 0)),
        compiler_params=cparams,
    )(x)
    # Single XLA copy pass back to the module's [E, K] convention.
    return jnp.transpose(out, (1, 2, 0)).reshape(E_pad, K)[:E]


def _radial_embedding_ref(edge_lengths, r_max, num_bessel, p):
    """Pure-JAX reference mirroring the PyTorch module."""
    r = jnp.asarray(edge_lengths, dtype=jnp.float32).reshape(-1, 1)   # (E, 1)
    k = jnp.arange(1, num_bessel + 1, dtype=jnp.float32)              # (K,)
    w = jnp.pi * k / r_max
    bessel = jnp.sqrt(2.0 / r_max) * jnp.sin(w * r) / r               # (E, K)
    u = r / r_max
    env = (1.0
           - (p + 1.0) * (p + 2.0) / 2.0 * u ** p
           + p * (p + 2.0) * u ** (p + 1)
           - p * (p + 1.0) / 2.0 * u ** (p + 2))
    cutoff = jnp.where(r < r_max, env, 0.0)                           # (E, 1)
    return bessel * cutoff


if __name__ == "__main__":
    # Module hyperparameters (constructor args of RadialEmbeddingBlock).
    R_MAX = 5.0
    NUM_BESSEL = 8
    NUM_POLY_CUTOFF = 5

    # Small, MACE-like input: edge_lengths of shape [num_edges, 1].
    # 96 edges (not a multiple of 128) exercises the ragged-padding path;
    # range [0.5, 6.0] exercises both sides of the r < r_max cutoff.
    key = jax.random.PRNGKey(0)
    edge_lengths = jax.random.uniform(
        key, (96, 1), minval=0.5, maxval=6.0, dtype=jnp.float32)

    y = radial_embedding(
        edge_lengths,
        r_max=R_MAX,
        num_bessel=NUM_BESSEL,
        num_polynomial_cutoff=NUM_POLY_CUTOFF)
    y = jax.block_until_ready(y)

    y_ref = _radial_embedding_ref(edge_lengths, R_MAX, NUM_BESSEL,
                                  NUM_POLY_CUTOFF)

    assert y.shape == (96, NUM_BESSEL), y.shape
    assert y.dtype == jnp.float32
    assert bool(jnp.all(jnp.isfinite(y)))
    # Tolerance covers the Chebyshev-recurrence / approx-reciprocal paths
    # (observed error is ~1e-6; bound kept loose-but-meaningful).
    assert jnp.allclose(y, y_ref, atol=1e-4, rtol=1e-4), float(
        jnp.max(jnp.abs(y - y_ref)))

    print("KERNEL_OK")
</pallas_src>

<mosaic_0001>
module attributes {stable_mosaic.version = 11 : i64} {
  func.func @_flat_kernel(%arg0: i32, %arg1: memref<1x8x128xf32, #tpu.memory_space<vmem>>, %arg2: memref<64x128xf32, #tpu.memory_space<vmem>>) attributes {dimension_semantics = [#tpu.dimension_semantics<parallel>], iteration_bounds = array<i64: 1>, scalar_prefetch = 0 : i64, scratch_operands = 0 : i64, tpu.core_type = #tpu.core_type<tc>, window_params = [{transform_indices = @transform_0, window_bounds = array<i64: 1, 8, 128>}, {transform_indices = @transform_1, window_bounds = array<i64: 64, 128>}]} {
    %c0 = arith.constant 0 : index
    %c0_0 = arith.constant 0 : index
    %c0_1 = arith.constant 0 : index
    %0 = vector.load %arg1[%c0, %c0_0, %c0_1] : memref<1x8x128xf32, #tpu.memory_space<vmem>>, vector<1x8x128xf32>
    %1 = vector.shape_cast %0 : vector<1x8x128xf32> to vector<8x128xf32>
    %2 = tpu.reciprocal %1 {approx = true} : vector<8x128xf32> -> vector<8x128xf32>
    %3 = arith.mulf %1, %2 : vector<8x128xf32>
    %cst = arith.constant 2.000000e+00 : f32
    %4 = vector.broadcast %cst : f32 to vector<8x128xf32>
    %5 = arith.subf %4, %3 : vector<8x128xf32>
    %6 = arith.mulf %2, %5 : vector<8x128xf32>
    %cst_2 = arith.constant 2.000000e-01 : f32
    %7 = vector.broadcast %cst_2 : f32 to vector<8x128xf32>
    %8 = arith.mulf %1, %7 : vector<8x128xf32>
    %9 = arith.mulf %8, %8 : vector<8x128xf32>
    %10 = arith.mulf %9, %8 : vector<8x128xf32>
    %11 = arith.mulf %10, %8 : vector<8x128xf32>
    %12 = arith.mulf %11, %8 : vector<8x128xf32>
    %13 = arith.mulf %12, %8 : vector<8x128xf32>
    %14 = arith.mulf %13, %8 : vector<8x128xf32>
    %cst_3 = arith.constant 2.100000e+01 : f32
    %15 = vector.broadcast %cst_3 : f32 to vector<8x128xf32>
    %16 = arith.mulf %15, %12 : vector<8x128xf32>
    %cst_4 = arith.constant 1.000000e+00 : f32
    %17 = vector.broadcast %cst_4 : f32 to vector<8x128xf32>
    %18 = arith.subf %17, %16 : vector<8x128xf32>
    %cst_5 = arith.constant 3.500000e+01 : f32
    %19 = vector.broadcast %cst_5 : f32 to vector<8x128xf32>
    %20 = arith.mulf %19, %13 : vector<8x128xf32>
    %21 = arith.addf %18, %20 : vector<8x128xf32>
    %cst_6 = arith.constant 1.500000e+01 : f32
    %22 = vector.broadcast %cst_6 : f32 to vector<8x128xf32>
    %23 = arith.mulf %22, %14 : vector<8x128xf32>
    %24 = arith.subf %21, %23 : vector<8x128xf32>
    %cst_7 = arith.constant 5.000000e+00 : f32
    %25 = vector.broadcast %cst_7 : f32 to vector<8x128xf32>
    %26 = arith.cmpf olt, %1, %25 : vector<8x128xf32>
    %cst_8 = arith.constant 0.000000e+00 : f32
    %27 = vector.broadcast %cst_8 : f32 to vector<8x128xf32>
    %28 = arith.select %26, %24, %27 : vector<8x128xi1>, vector<8x128xf32>
    %cst_9 = arith.constant 0.632455527 : f32
    %29 = vector.broadcast %cst_9 : f32 to vector<8x128xf32>
    %30 = arith.mulf %29, %6 : vector<8x128xf32>
    %31 = arith.mulf %30, %28 : vector<8x128xf32>
    %cst_10 = arith.constant 0.628318548 : f32
    %32 = vector.broadcast %cst_10 : f32 to vector<8x128xf32>
    %33 = arith.mulf %32, %1 : vector<8x128xf32>
    %34 = math.sin %33 : vector<8x128xf32>
    %35 = math.cos %33 : vector<8x128xf32>
    %cst_11 = arith.constant 2.000000e+00 : f32
    %36 = vector.broadcast %cst_11 : f32 to vector<8x128xf32>
    %37 = arith.mulf %36, %35 : vector<8x128xf32>
    %cst_12 = arith.constant 0.000000e+00 : f32
    %38 = vector.broadcast %cst_12 : f32 to vector<8x128xf32>
    %39 = arith.mulf %34, %31 : vector<8x128xf32>
    %40 = arith.mulf %37, %34 : vector<8x128xf32>
    %41 = arith.subf %40, %38 : vector<8x128xf32>
    %42 = arith.mulf %41, %31 : vector<8x128xf32>
    %43 = arith.mulf %37, %41 : vector<8x128xf32>
    %44 = arith.subf %43, %34 : vector<8x128xf32>
    %45 = arith.mulf %44, %31 : vector<8x128xf32>
    %46 = arith.mulf %37, %44 : vector<8x128xf32>
    %47 = arith.subf %46, %41 : vector<8x128xf32>
    %48 = arith.mulf %47, %31 : vector<8x128xf32>
    %49 = arith.mulf %37, %47 : vector<8x128xf32>
    %50 = arith.subf %49, %44 : vector<8x128xf32>
    %51 = arith.mulf %50, %31 : vector<8x128xf32>
    %52 = arith.mulf %37, %50 : vector<8x128xf32>
    %53 = arith.subf %52, %47 : vector<8x128xf32>
    %54 = arith.mulf %53, %31 : vector<8x128xf32>
    %55 = arith.mulf %37, %53 : vector<8x128xf32>
    %56 = arith.subf %55, %50 : vector<8x128xf32>
    %57 = arith.mulf %56, %31 : vector<8x128xf32>
    %58 = arith.mulf %37, %56 : vector<8x128xf32>
    %59 = arith.subf %58, %53 : vector<8x128xf32>
    %60 = arith.mulf %59, %31 : vector<8x128xf32>
    %61 = vector.extract_strided_slice %39 {offsets = [0, 0], sizes = [1, 128], strides = [1, 1]} : vector<8x128xf32> to vector<1x128xf32>
    %62 = vector.extract_strided_slice %42 {offsets = [0, 0], sizes = [1, 128], strides = [1, 1]} : vector<8x128xf32> to vector<1x128xf32>
    %63 = vector.extract_strided_slice %45 {offsets = [0, 0], sizes = [1, 128], strides = [1, 1]} : vector<8x128xf32> to vector<1x128xf32>
    %64 = vector.extract_strided_slice %48 {offsets = [0, 0], sizes = [1, 128], strides = [1, 1]} : vector<8x128xf32> to vector<1x128xf32>
    %65 = vector.extract_strided_slice %51 {offsets = [0, 0], sizes = [1, 128], strides = [1, 1]} : vector<8x128xf32> to vector<1x128xf32>
    %66 = vector.extract_strided_slice %54 {offsets = [0, 0], sizes = [1, 128], strides = [1, 1]} : vector<8x128xf32> to vector<1x128xf32>
    %67 = vector.extract_strided_slice %57 {offsets = [0, 0], sizes = [1, 128], strides = [1, 1]} : vector<8x128xf32> to vector<1x128xf32>
    %68 = vector.extract_strided_slice %60 {offsets = [0, 0], sizes = [1, 128], strides = [1, 1]} : vector<8x128xf32> to vector<1x128xf32>
    %69 = tpu.concatenate %61, %62, %63, %64, %65, %66, %67, %68 in 0 : vector<1x128xf32>, vector<1x128xf32>, vector<1x128xf32>, vector<1x128xf32>, vector<1x128xf32>, vector<1x128xf32>, vector<1x128xf32>, vector<1x128xf32> -> vector<8x128xf32>
    %70 = tpu.transpose %69, [1, 0] : vector<8x128xf32> -> vector<128x8xf32>
    %71 = vector.shape_cast %70 : vector<128x8xf32> to vector<8x128xf32>
    %c0_13 = arith.constant 0 : index
    %c0_14 = arith.constant 0 : index
    %72 = vector.load %arg2[%c0_13, %c0_14] : memref<64x128xf32, #tpu.memory_space<vmem>>, vector<8x128xf32>
    tpu.vector_store %arg2[%c0_13, %c0_14], %71 {strides = array<i32>} : memref<64x128xf32, #tpu.memory_space<vmem>>, vector<8x128xf32>,
    %73 = vector.extract_strided_slice %39 {offsets = [1, 0], sizes = [1, 128], strides = [1, 1]} : vector<8x128xf32> to vector<1x128xf32>
    %74 = vector.extract_strided_slice %42 {offsets = [1, 0], sizes = [1, 128], strides = [1, 1]} : vector<8x128xf32> to vector<1x128xf32>
    %75 = vector.extract_strided_slice %45 {offsets = [1, 0], sizes = [1, 128], strides = [1, 1]} : vector<8x128xf32> to vector<1x128xf32>
    %76 = vector.extract_strided_slice %48 {offsets = [1, 0], sizes = [1, 128], strides = [1, 1]} : vector<8x128xf32> to vector<1x128xf32>
    %77 = vector.extract_strided_slice %51 {offsets = [1, 0], sizes = [1, 128], strides = [1, 1]} : vector<8x128xf32> to vector<1x128xf32>
    %78 = vector.extract_strided_slice %54 {offsets = [1, 0], sizes = [1, 128], strides = [1, 1]} : vector<8x128xf32> to vector<1x128xf32>
    %79 = vector.extract_strided_slice %57 {offsets = [1, 0], sizes = [1, 128], strides = [1, 1]} : vector<8x128xf32> to vector<1x128xf32>
    %80 = vector.extract_strided_slice %60 {offsets = [1, 0], sizes = [1, 128], strides = [1, 1]} : vector<8x128xf32> to vector<1x128xf32>
    %81 = tpu.concatenate %73, %74, %75, %76, %77, %78, %79, %80 in 0 : vector<1x128xf32>, vector<1x128xf32>, vector<1x128xf32>, vector<1x128xf32>, vector<1x128xf32>, vector<1x128xf32>, vector<1x128xf32>, vector<1x128xf32> -> vector<8x128xf32>
    %82 = tpu.transpose %81, [1, 0] : vector<8x128xf32> -> vector<128x8xf32>
    %83 = vector.shape_cast %82 : vector<128x8xf32> to vector<8x128xf32>
    %c8 = arith.constant 8 : index
    %c0_15 = arith.constant 0 : index
    %84 = vector.load %arg2[%c8, %c0_15] : memref<64x128xf32, #tpu.memory_space<vmem>>, vector<8x128xf32>
    tpu.vector_store %arg2[%c8, %c0_15], %83 {strides = array<i32>} : memref<64x128xf32, #tpu.memory_space<vmem>>, vector<8x128xf32>,
    %85 = vector.extract_strided_slice %39 {offsets = [2, 0], sizes = [1, 128], strides = [1, 1]} : vector<8x128xf32> to vector<1x128xf32>
    %86 = vector.extract_strided_slice %42 {offsets = [2, 0], sizes = [1, 128], strides = [1, 1]} : vector<8x128xf32> to vector<1x128xf32>
    %87 = vector.extract_strided_slice %45 {offsets = [2, 0], sizes = [1, 128], strides = [1, 1]} : vector<8x128xf32> to vector<1x128xf32>
    %88 = vector.extract_strided_slice %48 {offsets = [2, 0], sizes = [1, 128], strides = [1, 1]} : vector<8x128xf32> to vector<1x128xf32>
    %89 = vector.extract_strided_slice %51 {offsets = [2, 0], sizes = [1, 128], strides = [1, 1]} : vector<8x128xf32> to vector<1x128xf32>
    %90 = vector.extract_strided_slice %54 {offsets = [2, 0], sizes = [1, 128], strides = [1, 1]} : vector<8x128xf32> to vector<1x128xf32>
    %91 = vector.extract_strided_slice %57 {offsets = [2, 0], sizes = [1, 128], strides = [1, 1]} : vector<8x128xf32> to vector<1x128xf32>
    %92 = vector.extract_strided_slice %60 {offsets = [2, 0], sizes = [1, 128], strides = [1, 1]} : vector<8x128xf32> to vector<1x128xf32>
    %93 = tpu.concatenate %85, %86, %87, %88, %89, %90, %91, %92 in 0 : vector<1x128xf32>, vector<1x128xf32>, vector<1x128xf32>, vector<1x128xf32>, vector<1x128xf32>, vector<1x128xf32>, vector<1x128xf32>, vector<1x128xf32> -> vector<8x128xf32>
    %94 = tpu.transpose %93, [1, 0] : vector<8x128xf32> -> vector<128x8xf32>
    %95 = vector.shape_cast %94 : vector<128x8xf32> to vector<8x128xf32>
    %c16 = arith.constant 16 : index
    %c0_16 = arith.constant 0 : index
    %96 = vector.load %arg2[%c16, %c0_16] : memref<64x128xf32, #tpu.memory_space<vmem>>, vector<8x128xf32>
    tpu.vector_store %arg2[%c16, %c0_16], %95 {strides = array<i32>} : memref<64x128xf32, #tpu.memory_space<vmem>>, vector<8x128xf32>,
    %97 = vector.extract_strided_slice %39 {offsets = [3, 0], sizes = [1, 128], strides = [1, 1]} : vector<8x128xf32> to vector<1x128xf32>
    %98 = vector.extract_strided_slice %42 {offsets = [3, 0], sizes = [1, 128], strides = [1, 1]} : vector<8x128xf32> to vector<1x128xf32>
    %99 = vector.extract_strided_slice %45 {offsets = [3, 0], sizes = [1, 128], strides = [1, 1]} : vector<8x128xf32> to vector<1x128xf32>
    %100 = vector.extract_strided_slice %48 {offsets = [3, 0], sizes = [1, 128], strides = [1, 1]} : vector<8x128xf32> to vector<1x128xf32>
    %101 = vector.extract_strided_slice %51 {offsets = [3, 0], sizes = [1, 128], strides = [1, 1]} : vector<8x128xf32> to vector<1x128xf32>
    %102 = vector.extract_strided_slice %54 {offsets = [3, 0], sizes = [1, 128], strides = [1, 1]} : vector<8x128xf32> to vector<1x128xf32>
    %103 = vector.extract_strided_slice %57 {offsets = [3, 0], sizes = [1, 128], strides = [1, 1]} : vector<8x128xf32> to vector<1x128xf32>
    %104 = vector.extract_strided_slice %60 {offsets = [3, 0], sizes = [1, 128], strides = [1, 1]} : vector<8x128xf32> to vector<1x128xf32>
    %105 = tpu.concatenate %97, %98, %99, %100, %101, %102, %103, %104 in 0 : vector<1x128xf32>, vector<1x128xf32>, vector<1x128xf32>, vector<1x128xf32>, vector<1x128xf32>, vector<1x128xf32>, vector<1x128xf32>, vector<1x128xf32> -> vector<8x128xf32>
    %106 = tpu.transpose %105, [1, 0] : vector<8x128xf32> -> vector<128x8xf32>
    %107 = vector.shape_cast %106 : vector<128x8xf32> to vector<8x128xf32>
    %c24 = arith.constant 24 : index
    %c0_17 = arith.constant 0 : index
    %108 = vector.load %arg2[%c24, %c0_17] : memref<64x128xf32, #tpu.memory_space<vmem>>, vector<8x128xf32>
    tpu.vector_store %arg2[%c24, %c0_17], %107 {strides = array<i32>} : memref<64x128xf32, #tpu.memory_space<vmem>>, vector<8x128xf32>,
    %109 = vector.extract_strided_slice %39 {offsets = [4, 0], sizes = [1, 128], strides = [1, 1]} : vector<8x128xf32> to vector<1x128xf32>
    %110 = vector.extract_strided_slice %42 {offsets = [4, 0], sizes = [1, 128], strides = [1, 1]} : vector<8x128xf32> to vector<1x128xf32>
    %111 = vector.extract_strided_slice %45 {offsets = [4, 0], sizes = [1, 128], strides = [1, 1]} : vector<8x128xf32> to vector<1x128xf32>
    %112 = vector.extract_strided_slice %48 {offsets = [4, 0], sizes = [1, 128], strides = [1, 1]} : vector<8x128xf32> to vector<1x128xf32>
    %113 = vector.extract_strided_slice %51 {offsets = [4, 0], sizes = [1, 128], strides = [1, 1]} : vector<8x128xf32> to vector<1x128xf32>
    %114 = vector.extract_strided_slice %54 {offsets = [4, 0], sizes = [1, 128], strides = [1, 1]} : vector<8x128xf32> to vector<1x128xf32>
    %115 = vector.extract_strided_slice %57 {offsets = [4, 0], sizes = [1, 128], strides = [1, 1]} : vector<8x128xf32> to vector<1x128xf32>
    %116 = vector.extract_strided_slice %60 {offsets = [4, 0], sizes = [1, 128], strides = [1, 1]} : vector<8x128xf32> to vector<1x128xf32>
    %117 = tpu.concatenate %109, %110, %111, %112, %113, %114, %115, %116 in 0 : vector<1x128xf32>, vector<1x128xf32>, vector<1x128xf32>, vector<1x128xf32>, vector<1x128xf32>, vector<1x128xf32>, vector<1x128xf32>, vector<1x128xf32> -> vector<8x128xf32>
    %118 = tpu.transpose %117, [1, 0] : vector<8x128xf32> -> vector<128x8xf32>
    %119 = vector.shape_cast %118 : vector<128x8xf32> to vector<8x128xf32>
    %c32 = arith.constant 32 : index
    %c0_18 = arith.constant 0 : index
    %120 = vector.load %arg2[%c32, %c0_18] : memref<64x128xf32, #tpu.memory_space<vmem>>, vector<8x128xf32>
    tpu.vector_store %arg2[%c32, %c0_18], %119 {strides = array<i32>} : memref<64x128xf32, #tpu.memory_space<vmem>>, vector<8x128xf32>,
    %121 = vector.extract_strided_slice %39 {offsets = [5, 0], sizes = [1, 128], strides = [1, 1]} : vector<8x128xf32> to vector<1x128xf32>
    %122 = vector.extract_strided_slice %42 {offsets = [5, 0], sizes = [1, 128], strides = [1, 1]} : vector<8x128xf32> to vector<1x128xf32>
    %123 = vector.extract_strided_slice %45 {offsets = [5, 0], sizes = [1, 128], strides = [1, 1]} : vector<8x128xf32> to vector<1x128xf32>
    %124 = vector.extract_strided_slice %48 {offsets = [5, 0], sizes = [1, 128], strides = [1, 1]} : vector<8x128xf32> to vector<1x128xf32>
    %125 = vector.extract_strided_slice %51 {offsets = [5, 0], sizes = [1, 128], strides = [1, 1]} : vector<8x128xf32> to vector<1x128xf32>
    %126 = vector.extract_strided_slice %54 {offsets = [5, 0], sizes = [1, 128], strides = [1, 1]} : vector<8x128xf32> to vector<1x128xf32>
    %127 = vector.extract_strided_slice %57 {offsets = [5, 0], sizes = [1, 128], strides = [1, 1]} : vector<8x128xf32> to vector<1x128xf32>
    %128 = vector.extract_strided_slice %60 {offsets = [5, 0], sizes = [1, 128], strides = [1, 1]} : vector<8x128xf32> to vector<1x128xf32>
    %129 = tpu.concatenate %121, %122, %123, %124, %125, %126, %127, %128 in 0 : vector<1x128xf32>, vector<1x128xf32>, vector<1x128xf32>, vector<1x128xf32>, vector<1x128xf32>, vector<1x128xf32>, vector<1x128xf32>, vector<1x128xf32> -> vector<8x128xf32>
    %130 = tpu.transpose %129, [1, 0] : vector<8x128xf32> -> vector<128x8xf32>
    %131 = vector.shape_cast %130 : vector<128x8xf32> to vector<8x128xf32>
    %c40 = arith.constant 40 : index
    %c0_19 = arith.constant 0 : index
    %132 = vector.load %arg2[%c40, %c0_19] : memref<64x128xf32, #tpu.memory_space<vmem>>, vector<8x128xf32>
    tpu.vector_store %arg2[%c40, %c0_19], %131 {strides = array<i32>} : memref<64x128xf32, #tpu.memory_space<vmem>>, vector<8x128xf32>,
    %133 = vector.extract_strided_slice %39 {offsets = [6, 0], sizes = [1, 128], strides = [1, 1]} : vector<8x128xf32> to vector<1x128xf32>
    %134 = vector.extract_strided_slice %42 {offsets = [6, 0], sizes = [1, 128], strides = [1, 1]} : vector<8x128xf32> to vector<1x128xf32>
    %135 = vector.extract_strided_slice %45 {offsets = [6, 0], sizes = [1, 128], strides = [1, 1]} : vector<8x128xf32> to vector<1x128xf32>
    %136 = vector.extract_strided_slice %48 {offsets = [6, 0], sizes = [1, 128], strides = [1, 1]} : vector<8x128xf32> to vector<1x128xf32>
    %137 = vector.extract_strided_slice %51 {offsets = [6, 0], sizes = [1, 128], strides = [1, 1]} : vector<8x128xf32> to vector<1x128xf32>
    %138 = vector.extract_strided_slice %54 {offsets = [6, 0], sizes = [1, 128], strides = [1, 1]} : vector<8x128xf32> to vector<1x128xf32>
    %139 = vector.extract_strided_slice %57 {offsets = [6, 0], sizes = [1, 128], strides = [1, 1]} : vector<8x128xf32> to vector<1x128xf32>
    %140 = vector.extract_strided_slice %60 {offsets = [6, 0], sizes = [1, 128], strides = [1, 1]} : vector<8x128xf32> to vector<1x128xf32>
    %141 = tpu.concatenate %133, %134, %135, %136, %137, %138, %139, %140 in 0 : vector<1x128xf32>, vector<1x128xf32>, vector<1x128xf32>, vector<1x128xf32>, vector<1x128xf32>, vector<1x128xf32>, vector<1x128xf32>, vector<1x128xf32> -> vector<8x128xf32>
    %142 = tpu.transpose %141, [1, 0] : vector<8x128xf32> -> vector<128x8xf32>
    %143 = vector.shape_cast %142 : vector<128x8xf32> to vector<8x128xf32>
    %c48 = arith.constant 48 : index
    %c0_20 = arith.constant 0 : index
    %144 = vector.load %arg2[%c48, %c0_20] : memref<64x128xf32, #tpu.memory_space<vmem>>, vector<8x128xf32>
    tpu.vector_store %arg2[%c48, %c0_20], %143 {strides = array<i32>} : memref<64x128xf32, #tpu.memory_space<vmem>>, vector<8x128xf32>,
    %145 = vector.extract_strided_slice %39 {offsets = [7, 0], sizes = [1, 128], strides = [1, 1]} : vector<8x128xf32> to vector<1x128xf32>
    %146 = vector.extract_strided_slice %42 {offsets = [7, 0], sizes = [1, 128], strides = [1, 1]} : vector<8x128xf32> to vector<1x128xf32>
    %147 = vector.extract_strided_slice %45 {offsets = [7, 0], sizes = [1, 128], strides = [1, 1]} : vector<8x128xf32> to vector<1x128xf32>
    %148 = vector.extract_strided_slice %48 {offsets = [7, 0], sizes = [1, 128], strides = [1, 1]} : vector<8x128xf32> to vector<1x128xf32>
    %149 = vector.extract_strided_slice %51 {offsets = [7, 0], sizes = [1, 128], strides = [1, 1]} : vector<8x128xf32> to vector<1x128xf32>
    %150 = vector.extract_strided_slice %54 {offsets = [7, 0], sizes = [1, 128], strides = [1, 1]} : vector<8x128xf32> to vector<1x128xf32>
    %151 = vector.extract_strided_slice %57 {offsets = [7, 0], sizes = [1, 128], strides = [1, 1]} : vector<8x128xf32> to vector<1x128xf32>
    %152 = vector.extract_strided_slice %60 {offsets = [7, 0], sizes = [1, 128], strides = [1, 1]} : vector<8x128xf32> to vector<1x128xf32>
    %153 = tpu.concatenate %145, %146, %147, %148, %149, %150, %151, %152 in 0 : vector<1x128xf32>, vector<1x128xf32>, vector<1x128xf32>, vector<1x128xf32>, vector<1x128xf32>, vector<1x128xf32>, vector<1x128xf32>, vector<1x128xf32> -> vector<8x128xf32>
    %154 = tpu.transpose %153, [1, 0] : vector<8x128xf32> -> vector<128x8xf32>
    %155 = vector.shape_cast %154 : vector<128x8xf32> to vector<8x128xf32>
    %c56 = arith.constant 56 : index
    %c0_21 = arith.constant 0 : index
    %156 = vector.load %arg2[%c56, %c0_21] : memref<64x128xf32, #tpu.memory_space<vmem>>, vector<8x128xf32>
    tpu.vector_store %arg2[%c56, %c0_21], %155 {strides = array<i32>} : memref<64x128xf32, #tpu.memory_space<vmem>>, vector<8x128xf32>,
    return
  }
  func.func @transform_0(%arg0: i32) -> (i32, i32, i32) {
    %c0_i32 = arith.constant 0 : i32
    %c0_i32_0 = arith.constant 0 : i32
    %c0_i32_1 = arith.constant 0 : i32
    return %arg0, %c0_i32, %c0_i32_0 : i32, i32, i32
  }
  func.func @transform_1(%arg0: i32) -> (i32, i32) {
    %c0_i32 = arith.constant 0 : i32
    %c0_i32_0 = arith.constant 0 : i32
    return %arg0, %c0_i32 : i32, i32
  }
}

module attributes {stable_mosaic.version = 11 : i64} {
  func.func @_dense_kernel(%arg0: i32, %arg1: memref<1x8x128xf32, #tpu.memory_space<vmem>>, %arg2: memref<8x8x128xf32, #tpu.memory_space<vmem>>) attributes {dimension_semantics = [#tpu.dimension_semantics<parallel>], iteration_bounds = array<i64: 1>, scalar_prefetch = 0 : i64, scratch_operands = 0 : i64, tpu.core_type = #tpu.core_type<tc>, window_params = [{transform_indices = @transform_0, window_bounds = array<i64: 1, 8, 128>}, {transform_indices = @transform_1, window_bounds = array<i64: 8, 8, 128>}]} {
    %c0 = arith.constant 0 : index
    %c0_0 = arith.constant 0 : index
    %c0_1 = arith.constant 0 : index
    %0 = vector.load %arg1[%c0, %c0_0, %c0_1] : memref<1x8x128xf32, #tpu.memory_space<vmem>>, vector<1x8x128xf32>
    %1 = vector.shape_cast %0 : vector<1x8x128xf32> to vector<8x128xf32>
    %2 = tpu.reciprocal %1 {approx = true} : vector<8x128xf32> -> vector<8x128xf32>
    %3 = arith.mulf %1, %2 : vector<8x128xf32>
    %cst = arith.constant 2.000000e+00 : f32
    %4 = vector.broadcast %cst : f32 to vector<8x128xf32>
    %5 = arith.subf %4, %3 : vector<8x128xf32>
    %6 = arith.mulf %2, %5 : vector<8x128xf32>
    %cst_2 = arith.constant 2.000000e-01 : f32
    %7 = vector.broadcast %cst_2 : f32 to vector<8x128xf32>
    %8 = arith.mulf %1, %7 : vector<8x128xf32>
    %9 = arith.mulf %8, %8 : vector<8x128xf32>
    %10 = arith.mulf %9, %8 : vector<8x128xf32>
    %11 = arith.mulf %10, %8 : vector<8x128xf32>
    %12 = arith.mulf %11, %8 : vector<8x128xf32>
    %13 = arith.mulf %12, %8 : vector<8x128xf32>
    %14 = arith.mulf %13, %8 : vector<8x128xf32>
    %cst_3 = arith.constant 2.100000e+01 : f32
    %15 = vector.broadcast %cst_3 : f32 to vector<8x128xf32>
    %16 = arith.mulf %15, %12 : vector<8x128xf32>
    %cst_4 = arith.constant 1.000000e+00 : f32
    %17 = vector.broadcast %cst_4 : f32 to vector<8x128xf32>
    %18 = arith.subf %17, %16 : vector<8x128xf32>
    %cst_5 = arith.constant 3.500000e+01 : f32
    %19 = vector.broadcast %cst_5 : f32 to vector<8x128xf32>
    %20 = arith.mulf %19, %13 : vector<8x128xf32>
    %21 = arith.addf %18, %20 : vector<8x128xf32>
    %cst_6 = arith.constant 1.500000e+01 : f32
    %22 = vector.broadcast %cst_6 : f32 to vector<8x128xf32>
    %23 = arith.mulf %22, %14 : vector<8x128xf32>
    %24 = arith.subf %21, %23 : vector<8x128xf32>
    %cst_7 = arith.constant 5.000000e+00 : f32
    %25 = vector.broadcast %cst_7 : f32 to vector<8x128xf32>
    %26 = arith.cmpf olt, %1, %25 : vector<8x128xf32>
    %cst_8 = arith.constant 0.000000e+00 : f32
    %27 = vector.broadcast %cst_8 : f32 to vector<8x128xf32>
    %28 = arith.select %26, %24, %27 : vector<8x128xi1>, vector<8x128xf32>
    %cst_9 = arith.constant 0.632455527 : f32
    %29 = vector.broadcast %cst_9 : f32 to vector<8x128xf32>
    %30 = arith.mulf %29, %6 : vector<8x128xf32>
    %31 = arith.mulf %30, %28 : vector<8x128xf32>
    %cst_10 = arith.constant 0.628318548 : f32
    %32 = vector.broadcast %cst_10 : f32 to vector<8x128xf32>
    %33 = arith.mulf %32, %1 : vector<8x128xf32>
    %34 = math.sin %33 : vector<8x128xf32>
    %35 = math.cos %33 : vector<8x128xf32>
    %cst_11 = arith.constant 2.000000e+00 : f32
    %36 = vector.broadcast %cst_11 : f32 to vector<8x128xf32>
    %37 = arith.mulf %36, %35 : vector<8x128xf32>
    %cst_12 = arith.constant 0.000000e+00 : f32
    %38 = vector.broadcast %cst_12 : f32 to vector<8x128xf32>
    %39 = arith.mulf %34, %31 : vector<8x128xf32>
    %c0_13 = arith.constant 0 : index
    %c0_14 = arith.constant 0 : index
    %c0_15 = arith.constant 0 : index
    %40 = vector.load %arg2[%c0_13, %c0_14, %c0_15] : memref<8x8x128xf32, #tpu.memory_space<vmem>>, vector<1x8x128xf32>
    %41 = vector.shape_cast %40 : vector<1x8x128xf32> to vector<8x128xf32>
    %42 = vector.shape_cast %39 : vector<8x128xf32> to vector<1x8x128xf32>
    tpu.vector_store %arg2[%c0_13, %c0_14, %c0_15], %42 {strides = array<i32>} : memref<8x8x128xf32, #tpu.memory_space<vmem>>, vector<1x8x128xf32>,
    %43 = arith.mulf %37, %34 : vector<8x128xf32>
    %44 = arith.subf %43, %38 : vector<8x128xf32>
    %45 = arith.mulf %44, %31 : vector<8x128xf32>
    %c1 = arith.constant 1 : index
    %c0_16 = arith.constant 0 : index
    %c0_17 = arith.constant 0 : index
    %46 = vector.load %arg2[%c1, %c0_16, %c0_17] : memref<8x8x128xf32, #tpu.memory_space<vmem>>, vector<1x8x128xf32>
    %47 = vector.shape_cast %46 : vector<1x8x128xf32> to vector<8x128xf32>
    %48 = vector.shape_cast %45 : vector<8x128xf32> to vector<1x8x128xf32>
    tpu.vector_store %arg2[%c1, %c0_16, %c0_17], %48 {strides = array<i32>} : memref<8x8x128xf32, #tpu.memory_space<vmem>>, vector<1x8x128xf32>,
    %49 = arith.mulf %37, %44 : vector<8x128xf32>
    %50 = arith.subf %49, %34 : vector<8x128xf32>
    %51 = arith.mulf %50, %31 : vector<8x128xf32>
    %c2 = arith.constant 2 : index
    %c0_18 = arith.constant 0 : index
    %c0_19 = arith.constant 0 : index
    %52 = vector.load %arg2[%c2, %c0_18, %c0_19] : memref<8x8x128xf32, #tpu.memory_space<vmem>>, vector<1x8x128xf32>
    %53 = vector.shape_cast %52 : vector<1x8x128xf32> to vector<8x128xf32>
    %54 = vector.shape_cast %51 : vector<8x128xf32> to vector<1x8x128xf32>
    tpu.vector_store %arg2[%c2, %c0_18, %c0_19], %54 {strides = array<i32>} : memref<8x8x128xf32, #tpu.memory_space<vmem>>, vector<1x8x128xf32>,
    %55 = arith.mulf %37, %50 : vector<8x128xf32>
    %56 = arith.subf %55, %44 : vector<8x128xf32>
    %57 = arith.mulf %56, %31 : vector<8x128xf32>
    %c3 = arith.constant 3 : index
    %c0_20 = arith.constant 0 : index
    %c0_21 = arith.constant 0 : index
    %58 = vector.load %arg2[%c3, %c0_20, %c0_21] : memref<8x8x128xf32, #tpu.memory_space<vmem>>, vector<1x8x128xf32>
    %59 = vector.shape_cast %58 : vector<1x8x128xf32> to vector<8x128xf32>
    %60 = vector.shape_cast %57 : vector<8x128xf32> to vector<1x8x128xf32>
    tpu.vector_store %arg2[%c3, %c0_20, %c0_21], %60 {strides = array<i32>} : memref<8x8x128xf32, #tpu.memory_space<vmem>>, vector<1x8x128xf32>,
    %61 = arith.mulf %37, %56 : vector<8x128xf32>
    %62 = arith.subf %61, %50 : vector<8x128xf32>
    %63 = arith.mulf %62, %31 : vector<8x128xf32>
    %c4 = arith.constant 4 : index
    %c0_22 = arith.constant 0 : index
    %c0_23 = arith.constant 0 : index
    %64 = vector.load %arg2[%c4, %c0_22, %c0_23] : memref<8x8x128xf32, #tpu.memory_space<vmem>>, vector<1x8x128xf32>
    %65 = vector.shape_cast %64 : vector<1x8x128xf32> to vector<8x128xf32>
    %66 = vector.shape_cast %63 : vector<8x128xf32> to vector<1x8x128xf32>
    tpu.vector_store %arg2[%c4, %c0_22, %c0_23], %66 {strides = array<i32>} : memref<8x8x128xf32, #tpu.memory_space<vmem>>, vector<1x8x128xf32>,
    %67 = arith.mulf %37, %62 : vector<8x128xf32>
    %68 = arith.subf %67, %56 : vector<8x128xf32>
    %69 = arith.mulf %68, %31 : vector<8x128xf32>
    %c5 = arith.constant 5 : index
    %c0_24 = arith.constant 0 : index
    %c0_25 = arith.constant 0 : index
    %70 = vector.load %arg2[%c5, %c0_24, %c0_25] : memref<8x8x128xf32, #tpu.memory_space<vmem>>, vector<1x8x128xf32>
    %71 = vector.shape_cast %70 : vector<1x8x128xf32> to vector<8x128xf32>
    %72 = vector.shape_cast %69 : vector<8x128xf32> to vector<1x8x128xf32>
    tpu.vector_store %arg2[%c5, %c0_24, %c0_25], %72 {strides = array<i32>} : memref<8x8x128xf32, #tpu.memory_space<vmem>>, vector<1x8x128xf32>,
    %73 = arith.mulf %37, %68 : vector<8x128xf32>
    %74 = arith.subf %73, %62 : vector<8x128xf32>
    %75 = arith.mulf %74, %31 : vector<8x128xf32>
    %c6 = arith.constant 6 : index
    %c0_26 = arith.constant 0 : index
    %c0_27 = arith.constant 0 : index
    %76 = vector.load %arg2[%c6, %c0_26, %c0_27] : memref<8x8x128xf32, #tpu.memory_space<vmem>>, vector<1x8x128xf32>
    %77 = vector.shape_cast %76 : vector<1x8x128xf32> to vector<8x128xf32>
    %78 = vector.shape_cast %75 : vector<8x128xf32> to vector<1x8x128xf32>
    tpu.vector_store %arg2[%c6, %c0_26, %c0_27], %78 {strides = array<i32>} : memref<8x8x128xf32, #tpu.memory_space<vmem>>, vector<1x8x128xf32>,
    %79 = arith.mulf %37, %74 : vector<8x128xf32>
    %80 = arith.subf %79, %68 : vector<8x128xf32>
    %81 = arith.mulf %80, %31 : vector<8x128xf32>
    %c7 = arith.constant 7 : index
    %c0_28 = arith.constant 0 : index
    %c0_29 = arith.constant 0 : index
    %82 = vector.load %arg2[%c7, %c0_28, %c0_29] : memref<8x8x128xf32, #tpu.memory_space<vmem>>, vector<1x8x128xf32>
    %83 = vector.shape_cast %82 : vector<1x8x128xf32> to vector<8x128xf32>
    %84 = vector.shape_cast %81 : vector<8x128xf32> to vector<1x8x128xf32>
    tpu.vector_store %arg2[%c7, %c0_28, %c0_29], %84 {strides = array<i32>} : memref<8x8x128xf32, #tpu.memory_space<vmem>>, vector<1x8x128xf32>,
    return
  }
  func.func @transform_0(%arg0: i32) -> (i32, i32, i32) {
    %c0_i32 = arith.constant 0 : i32
    %c0_i32_0 = arith.constant 0 : i32
    %c0_i32_1 = arith.constant 0 : i32
    return %arg0, %c0_i32, %c0_i32_0 : i32, i32, i32
  }
  func.func @transform_1(%arg0: i32) -> (i32, i32, i32) {
    %c0_i32 = arith.constant 0 : i32
    %c0_i32_0 = arith.constant 0 : i32
    %c0_i32_1 = arith.constant 0 : i32
    return %c0_i32, %arg0, %c0_i32_0 : i32, i32, i32
  }
}

</mosaic_0001>

<bundles_post_ra>
// kernel: tpu_custom_call.1
= control target key start
LH: loop header
LB: loop body
LE: loop exit
PB: predicated region body
PF: predicated region fallthrough
CT: control target
= control target key end

     0   :  { %6 = vsyncpa [#allocation3], 0  ;;  %s453_s0 = inlined_call_operand.hbm [shape: f32[1,8,128], index: 0, kind: input, shape index: {}]   ;;  %s454_s1 = inlined_call_operand.hbm [shape: f32[8,8,128], index: 1, kind: output, shape index: {}]  }
   0x1   :  { %7 = vsyncpa [#allocation4], 0  ;;  %s381_s6 = smov [#allocation2]   ;;  %s333_s10 = scalar_lea.hbm %s453_s0, 128 }
   0x2   :  { %s14_s7 = sshll.u32 %s381_s6, 4  ;;  %p334_p0 = scmp.ne.s32.totalorder %s453_s0, %s333_s10  ;;  %s15_s7 = int_to_ptr.vmem [resolvable:$true] %s14_s7 }
   0x3   :  { %p337_p1 = scmp.lt.u32.totalorder %s333_s10, %s453_s0 }
   0x5   :  { %p339_p2 = pnand %p337_p1, %p334_p0 }
   0x7   :  { %342 = shalt.err (!%p339_p2)
}
   0x8   :  { %s343_s15 = scalar_lea.vmem %s15_s7, 128  ;;  %p348_p4 = scmp.lt.s32.totalorder %s15_s7, %s15_s7 }
   0x9   :  { %p344_p3 = scmp.ne.s32.totalorder %s15_s7, %s343_s15  ;;  %p349_p5 = scmp.lt.s32.totalorder %s343_s15, %s343_s15 }
   0xb   :  { %p350_p6 = por %p349_p5, %p348_p4 }
   0xd   :  { %p351_p7 = pnand %p350_p6, %p344_p3 }
   0xf   :  { %354 = shalt.err (!%p351_p7)
}
  0x10   :  { %17 = dma.hbm_to_vmem [thread:$0]  %s453_s0, 128, %s15_s7, [#allocation3]  }
  0x11   :  { %377 = dma.done.wait [#allocation3], 128  }
  0x12   :  { %378 = vsyncadd [#allocation3], 4294967168  ;;  %v413_v0 = vld [vmem:[#allocation2] sm:$0xff]  ;;  %v382_v12 = vmov 683565275   ;;  %s388_s0 = smov [#allocation5]  }
  0x13   :  { %v416_v1 = vmul.f32 0.62831855, %v413_v0  ;;  %v383_v14 = vmov 2475754826   ;;  %v384_v16 = vmov 2131351028   ;;  %327 = vrcp.f32 %v413_v0 }
  0x14   :  { %v385_v18 = vmov 2102212464   ;;  %v386_v20 = vmov 920167782   ;;  %v387_v28 = vmov 1326507024  }
  0x15   :  { %v47_v2 = vand.u32 2139095040, %v416_v1  ;;  %v44_v6 = vand.u32 2147483647, %v416_v1  ;;  %v26_v60 = vmul.f32 0.2, %v413_v0  ;;  %vm46_vm7 = vcmp.lt.s32.totalorder %v416_v1, 0 }
  0x16   :  { %vm39_vm9 = vcmp.lt.f32.partialorder %v413_v0, 5.0  ;;  %s293_s18 = sshll.u32 %s388_s0, 4  ;;  %s294_s18 = int_to_ptr.vmem [resolvable:$true] %s293_s18 }
  0x17   :  { %v48_v3 = vshrl.u32 %v47_v2, 23  ;;  %v51_v8 = vand.u32 8388607, %v44_v6  ;;  %v27_v63 = vmul.f32 %v26_v60, %v26_v60  ;;  %vm45_vm8 = vcmp.le.f32.partialorder %v44_v6, 0.7853982  ;;  %s355_s19 = scalar_lea.vmem %s294_s18, 1024  ;;  %p360_p9 = scmp.lt.s32.totalorder %s294_s18, %s294_s18 }
  0x18   :  { %p356_p8 = scmp.ne.s32.totalorder %s294_s18, %s355_s19  ;;  %p361_p10 = scmp.lt.s32.totalorder %s355_s19, %s355_s19 }
  0x19   :  { %v305_v4 = vadd.s32 4294967169, %v48_v3  ;;  %v52_v22 = vor.u32 8388608, %v51_v8 }
  0x1a   :  { %p362_p11 = por %p361_p10, %p360_p9 }
  0x1b   :  { %v54_v5 = vadd.s32 1, %v305_v4  ;;  %v92_v37 = vshll.u32 %v52_v22, 8  ;;  %v28_v4 = vmul.f32 %v27_v63, %v26_v60 }
  0x1c   :  { %p363_p12 = pnand %p362_p11, %p356_p8 }
  0x1d   :  { %vm55_vm0 = vcmp.gt.s32.totalorder %v54_v5, 0 }
  0x1e   :  { %v56_v7 = vsel %vm55_vm0, %v54_v5, 0  ;;  %vm136_vm0 = vweird.f32 %v416_v1 }
  0x1f   :  { %v58_v9 = vand.u32 31, %v56_v7  ;;  %v57_v10 = vshrl.u32 %v56_v7, 5 }
  0x21   :  { %v59_v11 = vsub.s32 32, %v58_v9  ;;  %v61_v13 = vshll.u32 %v382_v12, %v58_v9  ;;  %v64_v15 = vshll.u32 %v383_v14, %v58_v9  ;;  %v67_v17 = vshll.u32 %v384_v16, %v58_v9 }
  0x22   :  { %v70_v19 = vshll.u32 %v385_v18, %v58_v9  ;;  %v73_v21 = vshll.u32 %v386_v20, %v58_v9  ;;  %vm76_vm1 = vcmp.lt.s32.totalorder %v57_v10, 1  ;;  %vm78_vm2 = vcmp.lt.s32.totalorder %v57_v10, 3 }
  0x23   :  { %v60_v23 = vshrl.u32 %v382_v12, %v59_v11  ;;  %v62_v24 = vshrl.u32 %v383_v14, %v59_v11  ;;  %v65_v25 = vshrl.u32 %v384_v16, %v59_v11  ;;  %v68_v26 = vshrl.u32 %v385_v18, %v59_v11 }
  0x24   :  { %v71_v27 = vshrl.u32 %v386_v20, %v59_v11  ;;  %v74_v29 = vshrl.u32 %v387_v28, %v59_v11  ;;  %vm79_vm3 = vcmp.lt.s32.totalorder %v57_v10, 4  ;;  %vm77_vm4 = vcmp.lt.s32.totalorder %v57_v10, 2 }
  0x25   :  { %v63_v30 = vor.u32 %v62_v24, %v61_v13  ;;  %v66_v31 = vor.u32 %v65_v25, %v64_v15  ;;  %v69_v32 = vor.u32 %v68_v26, %v67_v17  ;;  %v29_v11 = vmul.f32 %v28_v4, %v26_v60 }
  0x26   :  { %v72_v33 = vor.u32 %v71_v27, %v70_v19  ;;  %v75_v34 = vor.u32 %v74_v29, %v73_v21  ;;  %v328_v21 = vpop.eup %327 }
  0x27   :  { %v80_v35 = vsel %vm76_vm1, %v60_v23, %v63_v30  ;;  %v84_v36 = vsel %vm76_vm1, %v63_v30, %v66_v31  ;;  %v81_v38 = vsel %vm79_vm3, %v69_v32, 2102212464  ;;  %v88_v40 = vsel %vm76_vm1, %v66_v31, %v69_v32 }
  0x28   :  { %v85_v39 = vsel %vm79_vm3, %v72_v33, 920167782  ;;  %v89_v41 = vsel %vm79_vm3, %v75_v34, 1326507024  ;;  %v82_v42 = vsel %vm78_vm2, %v66_v31, %v81_v38  ;;  %v30_v16 = vmul.f32 %v29_v11, %v26_v60 }
  0x29   :  { %v86_v43 = vsel %vm78_vm2, %v69_v32, %v85_v39  ;;  %v90_v44 = vsel %vm78_vm2, %v72_v33, %v89_v41  ;;  %v83_v45 = vsel %vm77_vm4, %v80_v35, %v82_v42  ;;  %v23_v27 = vmul.f32 %v328_v21, %v413_v0 }
  0x2a   :  { %v87_v46 = vsel %vm77_vm4, %v84_v36, %v86_v43  ;;  %v91_v47 = vsel %vm77_vm4, %v88_v40, %v90_v44  ;;  %v99_v52 = vmul.u32 %v92_v37, %v83_v45  ;;  %v31_v22 = vmul.f32 %v30_v16, %v26_v60 }
  0x2b   :  { %v422_v48 = vmul.u32.u64.low %v92_v37, %v91_v47  ;;  %v423_v49 = vmul.u32.u64.high %v92_v37, %v91_v47, %v422_v48  ;;  %v425_v50 = vmul.u32.u64.low %v92_v37, %v87_v46  ;;  %v426_v51 = vmul.u32.u64.high %v92_v37, %v87_v46, %v425_v50 }
  0x2c   :  { %v33_v23 = vmul.f32 21.0, %v30_v16  ;;  %v32_v28 = vmul.f32 %v31_v22, %v26_v60  ;;  %v35_v30 = vmul.f32 35.0, %v31_v22  ;;  %v24_v34 = vsub.f32 2.0, %v23_v27 }
  0x2d   :  { %vm101_vm5 = vc.u32 %v423_v49, %v425_v50  ;;  %v102_v53 = vadd.s32 1, %v426_v51  ;;  %v100_v5 = vadd.s32 %v425_v50, %v423_v49 }
  0x2e   :  { %v34_v29 = vsub.f32 1.0, %v33_v23  ;;  %v37_v36 = vmul.f32 15.0, %v32_v28  ;;  %v25_v38 = vmul.f32 %v328_v21, %v24_v34 }
  0x2f   :  { %v103_v54 = vsel %vm101_vm5, %v102_v53, %v426_v51 }
  0x30   :  { %v104_v55 = vadd.s32 %v103_v54, %v99_v52  ;;  %v36_v35 = vadd.f32 %v35_v30, %v34_v29  ;;  %v41_v41 = vmul.f32 0.6324555, %v25_v38 }
  0x32   :  { %v105_v56 = vadd.s32 536870912, %v104_v55  ;;  %v38_v39 = vsub.f32 %v36_v35, %v37_v36 }
  0x34   :  { %v106_v57 = vshrl.u32 %v105_v56, 30  ;;  %v40_v43 = vsel %vm39_vm9, %v38_v39, 0.0 }
  0x35   :  { %v42_v47 = vmul.f32 %v41_v41, %v40_v43 }
  0x36   :  { %v107_v58 = vshll.u32 %v106_v57, 30  ;;  %v130_v20 = vsub.s32 4, %v106_v57 }
  0x38   :  { %v108_v59 = vsub.s32 %v104_v55, %v107_v58  ;;  %v131_v26 = vsel %vm46_vm7, %v130_v20, %v106_v57 }
  0x39   :  { %v133_v33 = vsel %vm45_vm8, 0, %v131_v26 }
  0x3a   :  { %v110_v61 = vsub.s32 0, %v108_v59  ;;  %v137_v37 = vadd.s32 3, %v133_v33  ;;  %v241_v40 = vand.u32 3, %v133_v33 }
  0x3c   :  { %v306_v62 = vmin.u32 %v110_v61, %v108_v59  ;;  %v138_v6 = vand.u32 3, %v137_v37  ;;  %vm246_vm11 = vcmp.eq.s32.totalorder %v241_v40, 2  ;;  %vm243_vm13 = vcmp.eq.s32.totalorder %v241_v40, 0 }
  0x3d   :  { %vm242_vm15 = vcmp.lt.s32.totalorder %v241_v40, 2 }
  0x3e   :  { %v112_v2 = vclz %v306_v62  ;;  %vm143_vm10 = vcmp.eq.s32.totalorder %v138_v6, 2  ;;  %vm140_vm12 = vcmp.eq.s32.totalorder %v138_v6, 0  ;;  %vm139_vm14 = vcmp.lt.s32.totalorder %v138_v6, 2 }
  0x40   :  { %v307_v3 = vadd.s32 4294967294, %v112_v2 }
  0x42   :  { %vm308_vm6 = vcmp.lt.s32.totalorder %v307_v3, 0 }
  0x43   :  { %v115_v7 = vsel %vm308_vm6, 0, %v307_v3 }
  0x44   :  { %v116_v8 = vsub.s32 32, %v115_v7  ;;  %v117_v9 = vshll.u32 %v108_v59, %v115_v7  ;;  %v120_v10 = vsub.s32 4294967266, %v115_v7 }
  0x46   :  { %v118_v12 = vshrl.u32 %v100_v5, %v116_v8  ;;  %v121_v13 = vadd.s32 127, %v120_v10 }
  0x48   :  { %v119_v14 = vor.u32 %v118_v12, %v117_v9  ;;  %v122_v15 = vshll.u32 %v121_v13, 23 }
  0x4a   :  { %v123_v17 = vor.u32 4788187, %v122_v15  ;;  %v126_v18 = vcvt.s32.f32 %v119_v14 }
  0x4c   :  { %v124_v19 = vand.u32 2147483647, %v123_v17 }
  0x4e   :  { %v127_v24 = vmul.f32 %v126_v18, %v124_v19 }
  0x50   :  { %v128_v25 = vxor.u32 2147483648, %v127_v24 }
  0x52   :  { %v129_v31 = vsel %vm46_vm7, %v128_v25, %v127_v24 }
  0x53   :  { %v132_v32 = vsel %vm45_vm8, %v416_v1, %v129_v31 }
  0x54   :  { %329 = vcosq.f32 %v132_v32 }
  0x55   :  { %331 = vsinq.f32 %v132_v32 }
  0x5e   :  { %v330_v42 = vpop.eup %329 }
  0x5f   :  { %v332_v44 = vpop.eup %331  ;;  %v144_v45 = vxor.u32 2147483648, %v330_v42 }
  0x60   :  { %v141_v46 = vxor.u32 2147483648, %v332_v44 }
  0x61   :  { %v145_v48 = vsel %vm143_vm10, %v144_v45, %v332_v44  ;;  %v248_v49 = vsel %vm246_vm11, %v144_v45, %v332_v44 }
  0x62   :  { %v142_v50 = vsel %vm140_vm12, %v330_v42, %v141_v46  ;;  %v245_v51 = vsel %vm243_vm13, %v330_v42, %v141_v46 }
  0x63   :  { %v146_v0 = vsel %vm139_vm14, %v142_v50, %v145_v48  ;;  %v249_v52 = vsel %vm242_vm15, %v245_v51, %v248_v49 }
  0x64   :  { %v147_v53 = vsel %vm136_vm0, nan, %v146_v0  ;;  %v250_v54 = vsel %vm136_vm0, nan, %v249_v52 }
  0x65   :  { %v251_v55 = vmul.f32 2.0, %v250_v54  ;;  %v252_v56 = vmul.f32 %v147_v53, %v42_v47 }
  0x67   :  { %253 = vst [vmem:[#allocation5] sm:$0xff] %v252_v56  ;;  %v254_v57 = vmul.f32 %v251_v55, %v147_v53 }
  0x69   :  { %v255_v58 = vmul.f32 %v254_v57, %v42_v47  ;;  %v258_v59 = vmul.f32 %v254_v57, %v251_v55 }
  0x6b   :  { %257 = vst [vmem:[#allocation5 + $0x8] sm:$0xff] %v255_v58  ;;  %v259_v60 = vsub.f32 %v258_v59, %v147_v53 }
  0x6d   :  { %v260_v61 = vmul.f32 %v259_v60, %v42_v47  ;;  %v263_v62 = vmul.f32 %v259_v60, %v251_v55 }
  0x6f   :  { %262 = vst [vmem:[#allocation5 + $0x10] sm:$0xff] %v260_v61  ;;  %v264_v1 = vsub.f32 %v263_v62, %v254_v57 }
  0x71   :  { %v265_v63 = vmul.f32 %v264_v1, %v42_v47  ;;  %v268_v2 = vmul.f32 %v264_v1, %v251_v55 }
  0x73   :  { %267 = vst [vmem:[#allocation5 + $0x18] sm:$0xff] %v265_v63  ;;  %v269_v3 = vsub.f32 %v268_v2, %v259_v60 }
  0x75   :  { %v270_v4 = vmul.f32 %v269_v3, %v42_v47  ;;  %v273_v5 = vmul.f32 %v269_v3, %v251_v55 }
  0x77   :  { %272 = vst [vmem:[#allocation5 + $0x20] sm:$0xff] %v270_v4  ;;  %v274_v7 = vsub.f32 %v273_v5, %v264_v1 }
  0x79   :  { %v275_v8 = vmul.f32 %v274_v7, %v42_v47  ;;  %v278_v9 = vmul.f32 %v274_v7, %v251_v55 }
  0x7b   :  { %277 = vst [vmem:[#allocation5 + $0x28] sm:$0xff] %v275_v8  ;;  %v279_v10 = vsub.f32 %v278_v9, %v269_v3 }
  0x7d   :  { %v280_v11 = vmul.f32 %v279_v10, %v42_v47  ;;  %v283_v12 = vmul.f32 %v279_v10, %v251_v55 }
  0x7f   :  { %282 = vst [vmem:[#allocation5 + $0x30] sm:$0xff] %v280_v11  ;;  %v284_v13 = vsub.f32 %v283_v12, %v274_v7 }
  0x81   :  { %v285_v14 = vmul.f32 %v284_v13, %v42_v47 }
  0x83   :  { %287 = vst [vmem:[#allocation5 + $0x38] sm:$0xff] %v285_v14 }
  0x84   :  { %366 = shalt.err (!%p363_p12)
}
  0x85   :  { %s367_s22 = scalar_lea.hbm %s454_s1, 1024 }
  0x86   :  { %p368_p13 = scmp.ne.s32.totalorder %s454_s1, %s367_s22  ;;  %p371_p0 = scmp.lt.u32.totalorder %s367_s22, %s454_s1 }
  0x88   :  { %p373_p1 = pnand %p371_p0, %p368_p13 }
  0x8a   :  { %376 = shalt.err (!%p373_p1)
}
  0x8b   :  { %s389_s27 = smov 128   ;;  %s390_s28 = smov 8  }
  0x8c   :  { %299 = dma.vmem_to_hbm [thread:$0]  %s294_s18, 1024, %s454_s1, [#allocation4], %s389_s27, %s389_s27, %s390_s28  }
  0x8d   :  { %379 = dma.done.wait [#allocation4], 1024  }
  0x8e   :  { %380 = vsyncadd [#allocation4], 4294966272 }
  0x8f   :  { %303 = vsyncpa [#allocation3], 1 }
  0x90   :  { %304 = vsyncpa [#allocation4], 1 }

</bundles_post_ra>
